<compile_context>
chip_gen: v6e
topology: v6e:2x2x1
jax: 0.10.0
libtpu: 0.0.40
codegen_flags: <defaults>
</compile_context>

<pallas_src>
import jax
import jax.numpy as jnp
from jax import lax
from jax.experimental import pallas as pl
from jax.experimental.pallas import tpu as pltpu

LANES = 128              # vreg lane width
SUBLANES = 8             # f32 vreg sublane count (accumulator shape)
MAX_BLOCK_ROWS = 4096    # rows of 128 lanes per grid step (2 MiB f32 / input)
VMEM_LIMIT = 32 * 1024 * 1024


def _num_tensorcores() -> int:
    """TensorCores per Pallas device: 2 on megacore (v4/v5p) and v7x, else 1."""
    try:
        kind = jax.devices()[0].device_kind.lower()
    except Exception:
        return 1
    if "lite" in kind or "v5e" in kind or "v6e" in kind or "v6" in kind:
        return 1
    if "v4" in kind or "v5p" in kind or "v7" in kind:
        return 2
    return 1


def _sublane_multiple(dtype) -> int:
    # Packed sub-32-bit dtypes want 16 (bf16) / 32 (int8, fp8) row groups.
    return max(8, 32 // jnp.dtype(dtype).itemsize)


def _make_dice_kernel(n, block_rows, kblocks, need_mask):
    def kernel(x_ref, t_ref, inter_ref, denom_ref):
        k = pl.program_id(1)  # reduction axis (innermost, "arbitrary")

        @pl.when(k == 0)
        def _():
            inter_ref[...] = jnp.zeros_like(inter_ref)
            denom_ref[...] = jnp.zeros_like(denom_ref)

        x = x_ref[...].astype(jnp.float32)
        t = t_ref[...].astype(jnp.float32)
        # Single-transcendental sigmoid: one EUP push per vreg.
        s = 0.5 * jnp.tanh(0.5 * x) + 0.5

        if need_mask:
            # Trace-time specialised: only emitted when the grid over-covers n.
            c = pl.program_id(0)
            row0 = (c * kblocks + k) * block_rows
            ri = lax.broadcasted_iota(jnp.int32, (block_rows, LANES), 0)
            li = lax.broadcasted_iota(jnp.int32, (block_rows, LANES), 1)
            valid = (row0 + ri) * LANES + li < n
            s = jnp.where(valid, s, 0.0)
            t = jnp.where(valid, t, 0.0)

        # Reduce only the leading vreg-group axis: pure VPU vreg adds, no XLU.
        inter_ref[...] += jnp.sum((s * t).reshape(-1, SUBLANES, LANES), axis=0)
        denom_ref[...] += jnp.sum((s + t).reshape(-1, SUBLANES, LANES), axis=0)

    return kernel


def dice_loss(inputs, targets, smooth=1.0):
    """Pallas implementation of DiceLoss.forward(inputs, targets, smooth)."""
    n = int(inputs.size)
    x = inputs.reshape(-1)
    t = targets.reshape(-1)

    # Only a sub-128-element tail ever needs padding (pad values are
    # irrelevant: the in-kernel mask zeroes every flat index >= n).
    lane_pad = (-n) % LANES
    if lane_pad:
        x = jnp.pad(x, (0, lane_pad))
        t = jnp.pad(t, (0, lane_pad))
    rows = (n + lane_pad) // LANES
    x = x.reshape(rows, LANES)
    t = t.reshape(rows, LANES)

    sub = max(_sublane_multiple(x.dtype), _sublane_multiple(t.dtype))
    if rows < sub:
        # Tiny tensors (< sub*128 elems): pad a few rows so blocks stay
        # sublane-aligned; masked in-kernel, negligible copy.
        x = jnp.pad(x, ((0, sub - rows), (0, 0)))
        t = jnp.pad(t, ((0, sub - rows), (0, 0)))
        rows = sub

    ncores = max(1, min(_num_tensorcores(), rows // sub))
    rows_pc = pl.cdiv(rows, ncores)
    block_rows = min(MAX_BLOCK_ROWS, (rows_pc // sub) * sub)
    kblocks = pl.cdiv(rows, ncores * block_rows)
    need_mask = ncores * kblocks * block_rows * LANES != n
    last_block = pl.cdiv(rows, block_rows) - 1

    def in_index(c, k):
        # Clamp so redundant grid slots re-read the last valid block instead
        # of issuing an out-of-bounds DMA; their contribution is zeroed by the
        # in-kernel mask.
        return (jnp.minimum(c * kblocks + k, last_block), 0)

    in_spec = pl.BlockSpec((block_rows, LANES), in_index)
    out_spec = pl.BlockSpec((SUBLANES, LANES), lambda c, k: (c, 0))

    inter_p, denom_p = pl.pallas_call(
        _make_dice_kernel(n, block_rows, kblocks, need_mask),
        out_shape=(
            jax.ShapeDtypeStruct((ncores * SUBLANES, LANES), jnp.float32),
            jax.ShapeDtypeStruct((ncores * SUBLANES, LANES), jnp.float32),
        ),
        grid_spec=pltpu.PrefetchScalarGridSpec(
            num_scalar_prefetch=0,
            grid=(ncores, kblocks),
            in_specs=[in_spec, in_spec],
            out_specs=(out_spec, out_spec),
        ),
        compiler_params=pltpu.CompilerParams(
            dimension_semantics=("parallel", "arbitrary"),
            vmem_limit_bytes=VMEM_LIMIT),
    )(x, t)

    # Tiny final combine ((ncores*8,128) partials -> scalar) in plain JAX;
    # it fuses into a single small op under jit.
    intersection = jnp.sum(inter_p)
    denom = jnp.sum(denom_p)
    dice = (2.0 * intersection + smooth) / (denom + smooth)
    return 1.0 - dice


def _dice_loss_ref(inputs, targets, smooth=1.0):
    x = jax.nn.sigmoid(inputs.astype(jnp.float32)).reshape(-1)
    t = targets.astype(jnp.float32).reshape(-1)
    inter = jnp.sum(x * t)
    dice = (2.0 * inter + smooth) / (jnp.sum(x) + jnp.sum(t) + smooth)
    return 1.0 - dice


if __name__ == "__main__":
    key = jax.random.PRNGKey(0)
    k1, k2, k3, k4 = jax.random.split(key, 4)

    # NCHW logits and binary targets, as a UNet segmentation head would produce.
    inputs = jax.random.normal(k1, (2, 4, 16, 16), dtype=jnp.float32)
    targets = (jax.random.uniform(k2, (2, 4, 16, 16)) > 0.5).astype(jnp.float32)

    loss = jax.block_until_ready(jax.jit(dice_loss)(inputs, targets))
    ref = _dice_loss_ref(inputs, targets, smooth=1.0)
    assert jnp.allclose(loss, ref, atol=1e-5, rtol=1e-5), (loss, ref)

    # Non-128-aligned size exercises the in-kernel mask path (no big pad copy).
    inputs2 = jax.random.normal(k3, (2, 3, 15, 17), dtype=jnp.float32)
    targets2 = (jax.random.uniform(k4, (2, 3, 15, 17)) > 0.5).astype(jnp.float32)
    loss2 = jax.block_until_ready(jax.jit(dice_loss)(inputs2, targets2))
    ref2 = _dice_loss_ref(inputs2, targets2, smooth=1.0)
    assert jnp.allclose(loss2, ref2, atol=1e-5, rtol=1e-5), (loss2, ref2)

    print("KERNEL_OK")
</pallas_src>

<mosaic_0001>
module attributes {stable_mosaic.version = 11 : i64} {
  func.func @kernel(%arg0: i32, %arg1: i32, %arg2: memref<16x128xf32, #tpu.memory_space<vmem>>, %arg3: memref<16x128xf32, #tpu.memory_space<vmem>>, %arg4: memref<8x128xf32, #tpu.memory_space<vmem>>, %arg5: memref<8x128xf32, #tpu.memory_space<vmem>>) attributes {dimension_semantics = [#tpu.dimension_semantics<parallel>, #tpu.dimension_semantics<arbitrary>], iteration_bounds = array<i64: 1, 1>, scalar_prefetch = 0 : i64, scratch_operands = 0 : i64, tpu.core_type = #tpu.core_type<tc>, window_params = [{transform_indices = @transform_0, window_bounds = array<i64: 16, 128>}, {transform_indices = @transform_1, window_bounds = array<i64: 16, 128>}, {transform_indices = @transform_2, window_bounds = array<i64: 8, 128>}, {transform_indices = @transform_3, window_bounds = array<i64: 8, 128>}]} {
    %c0_i32 = arith.constant 0 : i32
    %0 = arith.cmpi eq, %arg1, %c0_i32 : i32
    %1 = arith.extui %0 : i1 to i32
    %c0_i32_0 = arith.constant 0 : i32
    %2 = arith.cmpi ne, %1, %c0_i32_0 : i32
    scf.if %2 {
      %cst_16 = arith.constant 0.000000e+00 : f32
      %24 = vector.broadcast %cst_16 : f32 to vector<8x128xf32>
      %c0_17 = arith.constant 0 : index
      %c0_18 = arith.constant 0 : index
      %25 = vector.load %arg4[%c0_17, %c0_18] : memref<8x128xf32, #tpu.memory_space<vmem>>, vector<8x128xf32>
      tpu.vector_store %arg4[%c0_17, %c0_18], %24 {strides = array<i32>} : memref<8x128xf32, #tpu.memory_space<vmem>>, vector<8x128xf32>,
      %cst_19 = arith.constant 0.000000e+00 : f32
      %26 = vector.broadcast %cst_19 : f32 to vector<8x128xf32>
      %c0_20 = arith.constant 0 : index
      %c0_21 = arith.constant 0 : index
      %27 = vector.load %arg5[%c0_20, %c0_21] : memref<8x128xf32, #tpu.memory_space<vmem>>, vector<8x128xf32>
      tpu.vector_store %arg5[%c0_20, %c0_21], %26 {strides = array<i32>} : memref<8x128xf32, #tpu.memory_space<vmem>>, vector<8x128xf32>,
    } else {
    }
    %c0 = arith.constant 0 : index
    %c0_1 = arith.constant 0 : index
    %3 = vector.load %arg2[%c0, %c0_1] : memref<16x128xf32, #tpu.memory_space<vmem>>, vector<16x128xf32>
    %c0_2 = arith.constant 0 : index
    %c0_3 = arith.constant 0 : index
    %4 = vector.load %arg3[%c0_2, %c0_3] : memref<16x128xf32, #tpu.memory_space<vmem>>, vector<16x128xf32>
    %cst = arith.constant 5.000000e-01 : f32
    %5 = vector.broadcast %cst : f32 to vector<16x128xf32>
    %6 = arith.mulf %5, %3 : vector<16x128xf32>
    %7 = math.tanh %6 : vector<16x128xf32>
    %cst_4 = arith.constant 5.000000e-01 : f32
    %8 = vector.broadcast %cst_4 : f32 to vector<16x128xf32>
    %9 = arith.mulf %8, %7 : vector<16x128xf32>
    %cst_5 = arith.constant 5.000000e-01 : f32
    %10 = vector.broadcast %cst_5 : f32 to vector<16x128xf32>
    %11 = arith.addf %9, %10 : vector<16x128xf32>
    %c0_6 = arith.constant 0 : index
    %c0_7 = arith.constant 0 : index
    %12 = vector.load %arg4[%c0_6, %c0_7] : memref<8x128xf32, #tpu.memory_space<vmem>>, vector<8x128xf32>
    %13 = arith.mulf %11, %4 : vector<16x128xf32>
    %14 = vector.shape_cast %13 : vector<16x128xf32> to vector<2x8x128xf32>
    %cst_8 = arith.constant dense<0.000000e+00> : vector<8x128xf32>
    %15 = vector.multi_reduction <add>, %14, %cst_8 [0] : vector<2x8x128xf32> to vector<8x128xf32>
    %16 = arith.addf %12, %15 : vector<8x128xf32>
    %c0_9 = arith.constant 0 : index
    %c0_10 = arith.constant 0 : index
    %17 = vector.load %arg4[%c0_9, %c0_10] : memref<8x128xf32, #tpu.memory_space<vmem>>, vector<8x128xf32>
    tpu.vector_store %arg4[%c0_9, %c0_10], %16 {strides = array<i32>} : memref<8x128xf32, #tpu.memory_space<vmem>>, vector<8x128xf32>,
    %c0_11 = arith.constant 0 : index
    %c0_12 = arith.constant 0 : index
    %18 = vector.load %arg5[%c0_11, %c0_12] : memref<8x128xf32, #tpu.memory_space<vmem>>, vector<8x128xf32>
    %19 = arith.addf %11, %4 : vector<16x128xf32>
    %20 = vector.shape_cast %19 : vector<16x128xf32> to vector<2x8x128xf32>
    %cst_13 = arith.constant dense<0.000000e+00> : vector<8x128xf32>
    %21 = vector.multi_reduction <add>, %20, %cst_13 [0] : vector<2x8x128xf32> to vector<8x128xf32>
    %22 = arith.addf %18, %21 : vector<8x128xf32>
    %c0_14 = arith.constant 0 : index
    %c0_15 = arith.constant 0 : index
    %23 = vector.load %arg5[%c0_14, %c0_15] : memref<8x128xf32, #tpu.memory_space<vmem>>, vector<8x128xf32>
    tpu.vector_store %arg5[%c0_14, %c0_15], %22 {strides = array<i32>} : memref<8x128xf32, #tpu.memory_space<vmem>>, vector<8x128xf32>,
    return
  }
  func.func @transform_0(%arg0: i32, %arg1: i32) -> (i32, i32) {
    %c1_i32 = arith.constant 1 : i32
    %0 = arith.muli %arg0, %c1_i32 : i32
    %1 = arith.addi %0, %arg1 : i32
    %c0_i32 = arith.constant 0 : i32
    %2 = arith.minsi %1, %c0_i32 : i32
    %c0_i32_0 = arith.constant 0 : i32
    %c0_i32_1 = arith.constant 0 : i32
    return %2, %c0_i32_0 : i32, i32
  }
  func.func @transform_1(%arg0: i32, %arg1: i32) -> (i32, i32) {
    %c1_i32 = arith.constant 1 : i32
    %0 = arith.muli %arg0, %c1_i32 : i32
    %1 = arith.addi %0, %arg1 : i32
    %c0_i32 = arith.constant 0 : i32
    %2 = arith.minsi %1, %c0_i32 : i32
    %c0_i32_0 = arith.constant 0 : i32
    %c0_i32_1 = arith.constant 0 : i32
    return %2, %c0_i32_0 : i32, i32
  }
  func.func @transform_2(%arg0: i32, %arg1: i32) -> (i32, i32) {
    %c0_i32 = arith.constant 0 : i32
    %c0_i32_0 = arith.constant 0 : i32
    return %arg0, %c0_i32 : i32, i32
  }
  func.func @transform_3(%arg0: i32, %arg1: i32) -> (i32, i32) {
    %c0_i32 = arith.constant 0 : i32
    %c0_i32_0 = arith.constant 0 : i32
    return %arg0, %c0_i32 : i32, i32
  }
}

</mosaic_0001>

<bundles_post_ra>
// kernel: dice_loss.1
= control target key start
LH: loop header
LB: loop body
LE: loop exit
PB: predicated region body
PF: predicated region fallthrough
CT: control target
= control target key end

     0   :  { %s170_s0 = inlined_call_operand.vmem [shape: f32[16,128], index: 0, kind: input, shape index: {}]   ;;  %s171_s1 = inlined_call_operand.vmem [shape: f32[16,128], index: 1, kind: input, shape index: {}]   ;;  %s172_s2 = inlined_call_operand.vmem [shape: f32[8,128], index: 2, kind: output, shape index: {0}]   ;;  %s173_s3 = inlined_call_operand.vmem [shape: f32[8,128], index: 3, kind: output, shape index: {1}]  }
   0x1   :  { %v83_v0 = vld [vmem:[%s170_s0] sm:$0xff]  ;;  %v84_v1 = vld [vmem:[%s170_s0 + $0x8] sm:$0xff] }
   0x2   :  { %v87_v2 = vmul.f32 0.5, %v83_v0  ;;  %v88_v3 = vmul.f32 0.5, %v84_v1  ;;  %v85_v7 = vld [vmem:[%s171_s1] sm:$0xff]  ;;  %v86_v9 = vld [vmem:[%s171_s1 + $0x8] sm:$0xff] }
   0x4   :  { %128 = vtanh.f32 %v87_v2 }
   0x5   :  { %130 = vtanh.f32 %v88_v3 }
  0x11   :  { %v129_v4 = vpop.eup %128 }
  0x12   :  { %v131_v5 = vpop.eup %130  ;;  %v91_v6 = vmul.f32 0.5, %v129_v4 }
  0x13   :  { %v92_v8 = vmul.f32 0.5, %v131_v5 }
  0x14   :  { %v93_v10 = vadd.f32 0.5, %v91_v6 }
  0x15   :  { %v94_v11 = vadd.f32 0.5, %v92_v8 }
  0x16   :  { %v96_v12 = vmul.f32 %v93_v10, %v85_v7  ;;  %v102_v13 = vadd.f32 %v93_v10, %v85_v7 }
  0x17   :  { %v97_v14 = vmul.f32 %v94_v11, %v86_v9  ;;  %v103_v15 = vadd.f32 %v94_v11, %v86_v9 }
  0x19   :  { %v98_v16 = vadd.f32 %v97_v14, %v96_v12  ;;  %v104_v17 = vadd.f32 %v103_v15, %v102_v13 }
  0x1b   :  { %100 = vst [vmem:[%s172_s2] sm:$0xff] %v98_v16  ;;  %106 = vst [vmem:[%s173_s3] sm:$0xff] %v104_v17 }

</bundles_post_ra>
